<compile_context>
chip_gen: v7x
topology: tpu7x:2x2x1
jax: 0.10.0
libtpu: 0.0.40
codegen_flags: <defaults>
</compile_context>

<pallas_src>
import jax
import jax.numpy as jnp
from jax.experimental import pallas as pl
from jax.experimental.pallas import tpu as pltpu

KNOWLEDGE_DIM = 1900           # hardcoded in Net.__init__
PREDNET_LEN1 = 512
PREDNET_LEN2 = 256

MAX_TILE_B = 1024              # rows per grid step (sweepable: 512 - 2048)
VMEM_LIMIT_BYTES = 32 * 1024 * 1024


def _round_up(x, m):
    return (x + m - 1) // m * m


def _sigmoid1(x):
    # Single-EUP-push sigmoid: sigmoid(x) == 0.5 * tanh(x / 2) + 0.5.
    return 0.5 * jnp.tanh(0.5 * x) + 0.5


def _net_kernel(skd_ref, w1sel_ref, b1_ref, w2_ref, b2_ref, w3_ref, b3_ref,
                out_ref):
    """Per-tile forward: scale + 3 PosLinear layers + sigmoids.

    skd_ref   : (TB, 3)  f32   packed [stu_emb[b,w], k_diff[w,w], e_diff[w]]
    w1sel_ref : (TB, 512) bf16  gathered |W1|^T rows
    w2_ref    : (512, 256) bf16 resident, w3_ref: (8, 256) bf16 (row 0 = |W3|)
    out_ref   : (1, 1, TB) f32  lane-dense output row
    """
    # Per-row scale: sigmoid(e_diff) * (sigmoid(stu) - sigmoid(k_diff)).
    sg = _sigmoid1(skd_ref[...])                                   # (TB, 3) f32
    scale = sg[:, 2:3] * (sg[:, 0:1] - sg[:, 1:2])                 # (TB, 1) f32

    # Layer 1 (PosLinear, one-hot collapsed): f32 affine (v5e-safe), bf16 tanh
    # (single EUP push, bf16 EUP on v6e/v7x), result already bf16 for the MXU.
    pre1 = scale * w1sel_ref[...].astype(jnp.float32) + b1_ref[...]   # (TB, 512)
    h1 = _sigmoid1(pre1.astype(jnp.bfloat16))                      # (TB, 512) bf16

    # Layer 2 (PosLinear): bf16 MXU matmul, f32 accumulation.
    pre2 = jnp.dot(h1, w2_ref[...],
                   preferred_element_type=jnp.float32) + b2_ref[...]  # (TB, 256)
    h2 = _sigmoid1(pre2.astype(jnp.bfloat16))                      # (TB, 256) bf16

    # Layer 3 (PosLinear, out=1): NT dot_general (contract last dims) so the
    # result is a lane-dense row (8, TB); row 0 holds the real logits (w3 is
    # zero-padded to 8 rows to keep MXU-friendly shapes).
    logits8 = jax.lax.dot_general(w3_ref[...], h2,
                                  (((1,), (1,)), ((), ())),
                                  preferred_element_type=jnp.float32)  # (8, TB)
    out_ref[0] = _sigmoid1(logits8[0:1, :] + b3_ref[...])          # (1, TB) f32


def init_params(key, knowledge_n, exer_n, word_n, student_n):
    """Deterministic Xavier-normal init matching the shapes in Net.__init__."""
    def xavier(k, shape):
        fan_out, fan_in = shape[0], shape[1]
        std = jnp.sqrt(2.0 / (fan_in + fan_out))
        return std * jax.random.normal(k, shape, dtype=jnp.float32)

    ks = jax.random.split(key, 8)
    return {
        "student_emb": xavier(ks[0], (student_n, KNOWLEDGE_DIM)),
        "k_difficulty": xavier(ks[1], (word_n, KNOWLEDGE_DIM)),
        "e_difficulty": xavier(ks[2], (word_n, 1)),
        "w1": xavier(ks[3], (PREDNET_LEN1, KNOWLEDGE_DIM)),   # PyTorch (out, in)
        "b1": 0.01 * jax.random.normal(ks[4], (PREDNET_LEN1,), dtype=jnp.float32),
        "w2": xavier(ks[5], (PREDNET_LEN2, PREDNET_LEN1)),
        "b2": 0.01 * jax.random.normal(ks[6], (PREDNET_LEN2,), dtype=jnp.float32),
        "w3": xavier(ks[7], (1, PREDNET_LEN2)),
        "b3": jnp.zeros((1,), dtype=jnp.float32),
    }


def preprocess_params(params):
    """One-time weight prep: PosLinear transform (== |W|), transposes, bf16."""
    w3_abs = jnp.abs(params["w3"]).astype(jnp.bfloat16)                  # (1, 256)
    w3_pad = jnp.zeros((8, PREDNET_LEN2), jnp.bfloat16).at[0:1, :].set(w3_abs)
    return {
        "w1_abs_t": jnp.abs(params["w1"]).T.astype(jnp.bfloat16),        # (1900, 512)
        "b1": params["b1"].reshape(1, -1).astype(jnp.float32),           # (1, 512)
        "w2_abs_t": jnp.abs(params["w2"]).T.astype(jnp.bfloat16),        # (512, 256)
        "b2": params["b2"].reshape(1, -1).astype(jnp.float32),           # (1, 256)
        "w3_pad": w3_pad,                                                # (8, 256)
        "b3": params["b3"].reshape(1, 1).astype(jnp.float32),            # (1, 1)
    }


def net_forward(params, prep, stu_id, input_exercise, inut_word, inut_format,
                inut_section, inut_wordlen, inut_cefr, input_knowledge_point):
    # NOTE: the reference forward builds its 1900-way one-hot from `inut_word`
    # itself (to_categorical(inut_word, 1900)) and never reads
    # `input_knowledge_point`, so the one-nonzero-per-row collapse used here is
    # exact; `inut_word` must be < 1900.  The other extra inputs are accepted
    # purely for signature fidelity.
    B = stu_id.shape[0]

    # --- tiny O(B) gathers in plain JAX -------------------------------------
    stu_val = params["student_emb"][stu_id, inut_word]       # stat_emb[b, word[b]]
    kd_val = params["k_difficulty"][inut_word, inut_word]    # row = word, col = one-hot pos
    ed_val = params["e_difficulty"][inut_word, 0]
    skd = jnp.stack([stu_val, kd_val, ed_val], axis=-1).astype(jnp.float32)  # (B, 3)
    w1_sel = prep["w1_abs_t"][inut_word]                     # (B, 512) bf16 stream

    # --- batch tiling --------------------------------------------------------
    # As few / as large tiles as possible; >= 2 tiles whenever B > MAX_TILE_B
    # so the "parallel" axis can use both TensorCores on v7x.
    n_tiles = max(1, -(-B // MAX_TILE_B))
    tile_b = _round_up(-(-B // n_tiles), 8)
    b_pad = n_tiles * tile_b
    if b_pad != B:
        skd = jnp.pad(skd, ((0, b_pad - B), (0, 0)))
        w1_sel = jnp.pad(w1_sel, ((0, b_pad - B), (0, 0)))

    batch_spec = lambda w: pl.BlockSpec((tile_b, w), lambda i: (i, 0))
    resident = lambda shape: pl.BlockSpec(shape, lambda i, _s=shape: (0,) * len(_s))

    out = pl.pallas_call(
        _net_kernel,
        out_shape=jax.ShapeDtypeStruct((n_tiles, 1, tile_b), jnp.float32),
        grid=(n_tiles,),
        in_specs=[
            batch_spec(3),                            # packed (stu, kd, ed)
            batch_spec(PREDNET_LEN1),                 # gathered |W1|^T rows (bf16)
            resident((1, PREDNET_LEN1)),              # b1
            resident((PREDNET_LEN1, PREDNET_LEN2)),   # |W2|^T (bf16), VMEM-resident
            resident((1, PREDNET_LEN2)),              # b2
            resident((8, PREDNET_LEN2)),              # |W3| (row 0), zero-padded
            resident((1, 1)),                         # b3
        ],
        out_specs=pl.BlockSpec((1, 1, tile_b), lambda i: (i, 0, 0)),
        compiler_params=pltpu.CompilerParams(
            dimension_semantics=("parallel",),        # batch axis -> both TCs
            vmem_limit_bytes=VMEM_LIMIT_BYTES),
    )(skd, w1_sel, prep["b1"], prep["w2_abs_t"], prep["b2"],
      prep["w3_pad"], prep["b3"])

    return out.reshape(-1)[:B]                        # matches output_1.view(-1)


def _reference_forward(params, stu_id, inut_word):
    """Dense pure-JAX f32 reference of the PyTorch forward (for validation)."""
    stat = jax.nn.sigmoid(params["student_emb"][stu_id])
    kdiff = jax.nn.sigmoid(params["k_difficulty"][inut_word])
    ediff = jax.nn.sigmoid(params["e_difficulty"][inut_word])
    onehot = jax.nn.one_hot(inut_word, KNOWLEDGE_DIM, dtype=jnp.float32)
    x = ediff * (stat - kdiff) * onehot
    h1 = jax.nn.sigmoid(x @ jnp.abs(params["w1"]).T + params["b1"])
    h2 = jax.nn.sigmoid(h1 @ jnp.abs(params["w2"]).T + params["b2"])
    return jax.nn.sigmoid(h2 @ jnp.abs(params["w3"]).T + params["b3"]).reshape(-1)


if __name__ == "__main__":
    # Small synthetic config (knowledge_n is unused by the module's forward).
    knowledge_n, exer_n, word_n, student_n = 1900, 10, 50, 20
    B = 8

    key = jax.random.PRNGKey(0)
    pkey, k1, k2 = jax.random.split(key, 3)
    params = init_params(pkey, knowledge_n, exer_n, word_n, student_n)
    prep = preprocess_params(params)

    stu_id = jax.random.randint(k1, (B,), 0, student_n)
    inut_word = jax.random.randint(k2, (B,), 0, word_n)   # also the one-hot column (< 1900)
    # Unused-by-forward inputs (kept for signature fidelity).
    input_exercise = jnp.zeros((B,), jnp.int32)
    inut_format = jnp.zeros((B,), jnp.int32)
    inut_section = jnp.zeros((B,), jnp.int32)
    inut_wordlen = jnp.zeros((B,), jnp.int32)
    inut_cefr = jnp.zeros((B,), jnp.int32)
    input_knowledge_point = jnp.zeros((B, KNOWLEDGE_DIM), jnp.float32)

    fwd = jax.jit(net_forward)
    out = fwd(params, prep, stu_id, input_exercise, inut_word, inut_format,
              inut_section, inut_wordlen, inut_cefr, input_knowledge_point)
    out = jax.block_until_ready(out)
    assert out.shape == (B,) and out.dtype == jnp.float32

    ref = _reference_forward(params, stu_id, inut_word)
    err = float(jnp.max(jnp.abs(out - ref)))
    assert err < 2e-2, f"max abs err vs reference: {err}"
    print("KERNEL_OK")
</pallas_src>

<mosaic_0001>
module attributes {stable_mosaic.version = 11 : i64} {
  func.func @_net_kernel(%arg0: i32, %arg1: memref<8x3xf32, #tpu.memory_space<vmem>>, %arg2: memref<8x512xbf16, #tpu.memory_space<vmem>>, %arg3: memref<1x512xf32, #tpu.memory_space<vmem>>, %arg4: memref<512x256xbf16, #tpu.memory_space<vmem>>, %arg5: memref<1x256xf32, #tpu.memory_space<vmem>>, %arg6: memref<8x256xbf16, #tpu.memory_space<vmem>>, %arg7: memref<1x1xf32, #tpu.memory_space<vmem>>, %arg8: memref<1x1x8xf32, #tpu.memory_space<vmem>>) attributes {dimension_semantics = [#tpu.dimension_semantics<parallel>], iteration_bounds = array<i64: 1>, scalar_prefetch = 0 : i64, scratch_operands = 0 : i64, tpu.core_type = #tpu.core_type<tc>, window_params = [{transform_indices = @transform_0, window_bounds = array<i64: 8, 3>}, {transform_indices = @transform_1, window_bounds = array<i64: 8, 512>}, {pipeline_mode = #tpu.pipeline_mode<synchronous>, transform_indices = @transform_2, window_bounds = array<i64: 1, 512>}, {pipeline_mode = #tpu.pipeline_mode<synchronous>, transform_indices = @transform_3, window_bounds = array<i64: 512, 256>}, {pipeline_mode = #tpu.pipeline_mode<synchronous>, transform_indices = @transform_4, window_bounds = array<i64: 1, 256>}, {pipeline_mode = #tpu.pipeline_mode<synchronous>, transform_indices = @transform_5, window_bounds = array<i64: 8, 256>}, {pipeline_mode = #tpu.pipeline_mode<synchronous>, transform_indices = @transform_6, window_bounds = array<i64: 1, 1>}, {transform_indices = @transform_7, window_bounds = array<i64: 1, 1, 8>}]} {
    %c0 = arith.constant 0 : index
    %c0_0 = arith.constant 0 : index
    %0 = vector.load %arg1[%c0, %c0_0] : memref<8x3xf32, #tpu.memory_space<vmem>>, vector<8x3xf32>
    %cst = arith.constant 5.000000e-01 : f32
    %1 = vector.broadcast %cst : f32 to vector<8x3xf32>
    %2 = arith.mulf %1, %0 : vector<8x3xf32>
    %3 = math.tanh %2 : vector<8x3xf32>
    %cst_1 = arith.constant 5.000000e-01 : f32
    %4 = vector.broadcast %cst_1 : f32 to vector<8x3xf32>
    %5 = arith.mulf %4, %3 : vector<8x3xf32>
    %cst_2 = arith.constant 5.000000e-01 : f32
    %6 = vector.broadcast %cst_2 : f32 to vector<8x3xf32>
    %7 = arith.addf %5, %6 : vector<8x3xf32>
    %8 = vector.extract_strided_slice %7 {offsets = [0, 2], sizes = [8, 1], strides = [1, 1]} : vector<8x3xf32> to vector<8x1xf32>
    %9 = vector.extract_strided_slice %7 {offsets = [0, 0], sizes = [8, 1], strides = [1, 1]} : vector<8x3xf32> to vector<8x1xf32>
    %10 = vector.extract_strided_slice %7 {offsets = [0, 1], sizes = [8, 1], strides = [1, 1]} : vector<8x3xf32> to vector<8x1xf32>
    %11 = arith.subf %9, %10 : vector<8x1xf32>
    %12 = arith.mulf %8, %11 : vector<8x1xf32>
    %c0_3 = arith.constant 0 : index
    %c0_4 = arith.constant 0 : index
    %13 = vector.load %arg2[%c0_3, %c0_4] : memref<8x512xbf16, #tpu.memory_space<vmem>>, vector<8x512xbf16>
    %14 = arith.extf %13 : vector<8x512xbf16> to vector<8x512xf32>
    %15 = vector.broadcast %12 : vector<8x1xf32> to vector<8x512xf32>
    %16 = arith.mulf %15, %14 : vector<8x512xf32>
    %c0_5 = arith.constant 0 : index
    %c0_6 = arith.constant 0 : index
    %17 = vector.load %arg3[%c0_5, %c0_6] : memref<1x512xf32, #tpu.memory_space<vmem>>, vector<1x512xf32>
    %18 = vector.broadcast %17 : vector<1x512xf32> to vector<8x512xf32>
    %19 = arith.addf %16, %18 : vector<8x512xf32>
    %20 = arith.truncf %19 : vector<8x512xf32> to vector<8x512xbf16>
    %cst_7 = arith.constant 5.000000e-01 : bf16
    %21 = vector.broadcast %cst_7 : bf16 to vector<8x512xbf16>
    %22 = arith.mulf %21, %20 : vector<8x512xbf16>
    %23 = math.tanh %22 : vector<8x512xbf16>
    %cst_8 = arith.constant 5.000000e-01 : bf16
    %24 = vector.broadcast %cst_8 : bf16 to vector<8x512xbf16>
    %25 = arith.mulf %24, %23 : vector<8x512xbf16>
    %cst_9 = arith.constant 5.000000e-01 : bf16
    %26 = vector.broadcast %cst_9 : bf16 to vector<8x512xbf16>
    %27 = arith.addf %25, %26 : vector<8x512xbf16>
    %c0_10 = arith.constant 0 : index
    %c0_11 = arith.constant 0 : index
    %28 = vector.load %arg4[%c0_10, %c0_11] : memref<512x256xbf16, #tpu.memory_space<vmem>>, vector<512x256xbf16>
    %cst_12 = arith.constant dense<0.000000e+00> : vector<8x256xf32>
    %29 = tpu.matmul %27, %28, %cst_12 {dimension_numbers = #tpu.dot_dimension_numbers<[1], [0], [0], [1], [0, 0, 1, 1], [], []>} : vector<8x512xbf16>, vector<512x256xbf16>, vector<8x256xf32> -> vector<8x256xf32>
    %c0_13 = arith.constant 0 : index
    %c0_14 = arith.constant 0 : index
    %30 = vector.load %arg5[%c0_13, %c0_14] : memref<1x256xf32, #tpu.memory_space<vmem>>, vector<1x256xf32>
    %31 = vector.broadcast %30 : vector<1x256xf32> to vector<8x256xf32>
    %32 = arith.addf %29, %31 : vector<8x256xf32>
    %33 = arith.truncf %32 : vector<8x256xf32> to vector<8x256xbf16>
    %cst_15 = arith.constant 5.000000e-01 : bf16
    %34 = vector.broadcast %cst_15 : bf16 to vector<8x256xbf16>
    %35 = arith.mulf %34, %33 : vector<8x256xbf16>
    %36 = math.tanh %35 : vector<8x256xbf16>
    %cst_16 = arith.constant 5.000000e-01 : bf16
    %37 = vector.broadcast %cst_16 : bf16 to vector<8x256xbf16>
    %38 = arith.mulf %37, %36 : vector<8x256xbf16>
    %cst_17 = arith.constant 5.000000e-01 : bf16
    %39 = vector.broadcast %cst_17 : bf16 to vector<8x256xbf16>
    %40 = arith.addf %38, %39 : vector<8x256xbf16>
    %c0_18 = arith.constant 0 : index
    %c0_19 = arith.constant 0 : index
    %41 = vector.load %arg6[%c0_18, %c0_19] : memref<8x256xbf16, #tpu.memory_space<vmem>>, vector<8x256xbf16>
    %cst_20 = arith.constant dense<0.000000e+00> : vector<8x8xf32>
    %42 = tpu.matmul %41, %40, %cst_20 {dimension_numbers = #tpu.dot_dimension_numbers<[1], [1], [0], [0], [0, 0, 1, 0], [], []>} : vector<8x256xbf16>, vector<8x256xbf16>, vector<8x8xf32> -> vector<8x8xf32>
    %43 = vector.extract_strided_slice %42 {offsets = [0, 0], sizes = [1, 8], strides = [1, 1]} : vector<8x8xf32> to vector<1x8xf32>
    %c0_21 = arith.constant 0 : index
    %c0_22 = arith.constant 0 : index
    %44 = vector.load %arg7[%c0_21, %c0_22] : memref<1x1xf32, #tpu.memory_space<vmem>>, vector<1x1xf32>
    %45 = vector.broadcast %44 : vector<1x1xf32> to vector<1x8xf32>
    %46 = arith.addf %43, %45 : vector<1x8xf32>
    %cst_23 = arith.constant 5.000000e-01 : f32
    %47 = vector.broadcast %cst_23 : f32 to vector<1x8xf32>
    %48 = arith.mulf %47, %46 : vector<1x8xf32>
    %49 = math.tanh %48 : vector<1x8xf32>
    %cst_24 = arith.constant 5.000000e-01 : f32
    %50 = vector.broadcast %cst_24 : f32 to vector<1x8xf32>
    %51 = arith.mulf %50, %49 : vector<1x8xf32>
    %cst_25 = arith.constant 5.000000e-01 : f32
    %52 = vector.broadcast %cst_25 : f32 to vector<1x8xf32>
    %53 = arith.addf %51, %52 : vector<1x8xf32>
    %c0_26 = arith.constant 0 : index
    %c0_27 = arith.constant 0 : index
    %c0_28 = arith.constant 0 : index
    %54 = vector.load %arg8[%c0_26, %c0_27, %c0_28] : memref<1x1x8xf32, #tpu.memory_space<vmem>>, vector<1x1x8xf32>
    %55 = vector.shape_cast %54 : vector<1x1x8xf32> to vector<1x8xf32>
    %56 = vector.shape_cast %53 : vector<1x8xf32> to vector<1x1x8xf32>
    tpu.vector_store %arg8[%c0_26, %c0_27, %c0_28], %56 {strides = array<i32>} : memref<1x1x8xf32, #tpu.memory_space<vmem>>, vector<1x1x8xf32>,
    return
  }
  func.func @transform_0(%arg0: i32) -> (i32, i32) {
    %c0_i32 = arith.constant 0 : i32
    %c0_i32_0 = arith.constant 0 : i32
    return %arg0, %c0_i32 : i32, i32
  }
  func.func @transform_1(%arg0: i32) -> (i32, i32) {
    %c0_i32 = arith.constant 0 : i32
    %c0_i32_0 = arith.constant 0 : i32
    return %arg0, %c0_i32 : i32, i32
  }
  func.func @transform_2(%arg0: i32) -> (i32, i32) {
    %c0_i32 = arith.constant 0 : i32
    %c0_i32_0 = arith.constant 0 : i32
    %c0_i32_1 = arith.constant 0 : i32
    return %c0_i32, %c0_i32_0 : i32, i32
  }
  func.func @transform_3(%arg0: i32) -> (i32, i32) {
    %c0_i32 = arith.constant 0 : i32
    %c0_i32_0 = arith.constant 0 : i32
    %c0_i32_1 = arith.constant 0 : i32
    return %c0_i32, %c0_i32_0 : i32, i32
  }
  func.func @transform_4(%arg0: i32) -> (i32, i32) {
    %c0_i32 = arith.constant 0 : i32
    %c0_i32_0 = arith.constant 0 : i32
    %c0_i32_1 = arith.constant 0 : i32
    return %c0_i32, %c0_i32_0 : i32, i32
  }
  func.func @transform_5(%arg0: i32) -> (i32, i32) {
    %c0_i32 = arith.constant 0 : i32
    %c0_i32_0 = arith.constant 0 : i32
    %c0_i32_1 = arith.constant 0 : i32
    return %c0_i32, %c0_i32_0 : i32, i32
  }
  func.func @transform_6(%arg0: i32) -> (i32, i32) {
    %c0_i32 = arith.constant 0 : i32
    %c0_i32_0 = arith.constant 0 : i32
    %c0_i32_1 = arith.constant 0 : i32
    return %c0_i32, %c0_i32_0 : i32, i32
  }
  func.func @transform_7(%arg0: i32) -> (i32, i32, i32) {
    %c0_i32 = arith.constant 0 : i32
    %c0_i32_0 = arith.constant 0 : i32
    %c0_i32_1 = arith.constant 0 : i32
    return %arg0, %c0_i32, %c0_i32_0 : i32, i32, i32
  }
}

</mosaic_0001>

<bundles_post_ra>
// kernel: net_forward.1
= control target key start
LH: loop header
LB: loop body
LE: loop exit
PB: predicated region body
PF: predicated region fallthrough
CT: control target
= control target key end

     0   :  { %s1181_s0 = inlined_call_operand.vmem [shape: f32[8,3], index: 0, kind: input, shape index: {}]   ;;  %s1182_s1 = inlined_call_operand.vmem [shape: bf16[8,512], index: 1, kind: input, shape index: {}]   ;;  %s1183_s2 = inlined_call_operand.hbm [shape: f32[1,512], index: 2, kind: input, shape index: {}]   ;;  %s1184_s3 = inlined_call_operand.hbm [shape: bf16[512,256], index: 3, kind: input, shape index: {}]   ;;  %s1185_s4 = inlined_call_operand.hbm [shape: f32[1,256], index: 4, kind: input, shape index: {}]   ;;  %s1186_s5 = inlined_call_operand.hbm [shape: bf16[8,256], index: 5, kind: input, shape index: {}]   ;;  %s1187_s6 = inlined_call_operand.<no memory space> [shape: f32[1,1], index: 6, kind: input, shape index: {}]   ;;  %s1188_s7 = inlined_call_operand.hbm [shape: f32[1,1,8], index: 7, kind: output, shape index: {}]  }
   0x1   :  { %v12_v0 = vstv %s1187_s6 }
   0x2   :  { %13 = vst [vmem:[#allocation2] sm:$0x1] %v12_v0 }
   0x3   :  { %14 = vsyncpa [#allocation4], 0 }
   0x4   :  { %15 = vsyncpa [#allocation7], 0 }
   0x5   :  { %16 = vsyncpa [#allocation10], 0 }
   0x6   :  { %17 = vsyncpa [#allocation5], 0  ;;  %s1042_s26 = smov [#allocation6]   ;;  %s924_s30 = scalar_lea.hbm %s1184_s3, 8192 }
   0x7   :  { %s37_s27 = sshll.u32 %s1042_s26, 4  ;;  %p925_p0 = scmp.ne.s32.totalorder %s1184_s3, %s924_s30  ;;  %s38_s27 = int_to_ptr.vmem [resolvable:$true] %s37_s27 }
   0x8   :  { %p928_p1 = scmp.lt.u32.totalorder %s924_s30, %s1184_s3 }
   0xa   :  { %p930_p2 = pnand %p928_p1, %p925_p0 }
   0xc   :  { %933 = shalt.err (!%p930_p2)
}
   0xd   :  { %s934_s6 = scalar_lea.vmem %s38_s27, 8192  ;;  %p939_p4 = scmp.lt.s32.totalorder %s38_s27, %s38_s27 }
   0xe   :  { %p935_p3 = scmp.ne.s32.totalorder %s38_s27, %s934_s6  ;;  %p940_p5 = scmp.lt.s32.totalorder %s934_s6, %s934_s6 }
  0x10   :  { %p941_p6 = por %p940_p5, %p939_p4 }
  0x12   :  { %p942_p7 = pnand %p941_p6, %p935_p3 }
  0x14   :  { %945 = shalt.err (!%p942_p7)
}
  0x15   :  { %s1043_s12 = smov 128   ;;  %s1044_s13 = smov 8  }
  0x16   :  { %43 = dma.hbm_to_vmem [thread:$0]  %s1184_s3, 8192, %s38_s27, [#allocation7], %s1043_s12, %s1043_s12, %s1044_s13  }
  0x17   :  { %s1045_s16 = smov [#allocation3]   ;;  %s1046_s18 = smov [#allocation8]  }
  0x18   :  { %s28_s17 = sshll.u32 %s1045_s16, 4  ;;  %s50_s19 = sshll.u32 %s1046_s18, 4  ;;  %s29_s17 = int_to_ptr.vmem [resolvable:$true] %s28_s17  ;;  %s51_s19 = int_to_ptr.vmem [resolvable:$true] %s50_s19 }
  0x19   :  { %s946_s22 = scalar_lea.hbm %s1183_s2, 64 }
  0x1a   :  { %p947_p8 = scmp.ne.s32.totalorder %s1183_s2, %s946_s22  ;;  %p950_p9 = scmp.lt.u32.totalorder %s946_s22, %s1183_s2 }
  0x1c   :  { %p952_p10 = pnand %p950_p9, %p947_p8 }
  0x1e   :  { %955 = shalt.err (!%p952_p10)
}
  0x1f   :  { %s956_s3 = scalar_lea.vmem %s29_s17, 64  ;;  %p961_p12 = scmp.lt.s32.totalorder %s29_s17, %s29_s17 }
  0x20   :  { %p957_p11 = scmp.ne.s32.totalorder %s29_s17, %s956_s3  ;;  %p962_p13 = scmp.lt.s32.totalorder %s956_s3, %s956_s3 }
  0x22   :  { %p963_p0 = por %p962_p13, %p961_p12 }
  0x24   :  { %p964_p1 = pnand %p963_p0, %p957_p11 }
  0x26   :  { %967 = shalt.err (!%p964_p1)
}
  0x27   :  { %31 = dma.hbm_to_vmem [thread:$0]  %s1183_s2, 64, %s29_s17, [#allocation4]  }
  0x28   :  { %s968_s8 = scalar_lea.hbm %s1185_s4, 32 }
  0x29   :  { %p969_p2 = scmp.ne.s32.totalorder %s1185_s4, %s968_s8  ;;  %p972_p3 = scmp.lt.u32.totalorder %s968_s8, %s1185_s4 }
  0x2b   :  { %p974_p4 = pnand %p972_p3, %p969_p2 }
  0x2d   :  { %977 = shalt.err (!%p974_p4)
}
  0x2e   :  { %s978_s12 = scalar_lea.vmem %s51_s19, 32  ;;  %p983_p6 = scmp.lt.s32.totalorder %s51_s19, %s51_s19 }
  0x2f   :  { %p979_p5 = scmp.ne.s32.totalorder %s51_s19, %s978_s12  ;;  %p984_p7 = scmp.lt.s32.totalorder %s978_s12, %s978_s12 }
  0x31   :  { %p985_p8 = por %p984_p7, %p983_p6 }
  0x33   :  { %p986_p9 = pnand %p985_p8, %p979_p5 }
  0x35   :  { %989 = shalt.err (!%p986_p9)
}
  0x36   :  { %53 = dma.hbm_to_vmem [thread:$0]  %s1185_s4, 32, %s51_s19, [#allocation7]  }
  0x37   :  { %s1047_s14 = smov [#allocation9]   ;;  %s990_s18 = scalar_lea.hbm %s1186_s5, 128 }
  0x38   :  { %s60_s15 = sshll.u32 %s1047_s14, 4  ;;  %p991_p10 = scmp.ne.s32.totalorder %s1186_s5, %s990_s18  ;;  %s61_s15 = int_to_ptr.vmem [resolvable:$true] %s60_s15 }
  0x39   :  { %p994_p11 = scmp.lt.u32.totalorder %s990_s18, %s1186_s5 }
  0x3b   :  { %p996_p12 = pnand %p994_p11, %p991_p10 }
  0x3d   :  { %999 = shalt.err (!%p996_p12)
}
  0x3e   :  { %s1000_s24 = scalar_lea.vmem %s61_s15, 128  ;;  %p1005_p0 = scmp.lt.s32.totalorder %s61_s15, %s61_s15 }
  0x3f   :  { %p1001_p13 = scmp.ne.s32.totalorder %s61_s15, %s1000_s24  ;;  %p1006_p1 = scmp.lt.s32.totalorder %s1000_s24, %s1000_s24 }
  0x41   :  { %p1007_p2 = por %p1006_p1, %p1005_p0 }
  0x43   :  { %p1008_p3 = pnand %p1007_p2, %p1001_p13 }
  0x45   :  { %1011 = shalt.err (!%p1008_p3)
}
  0x46   :  { %63 = dma.hbm_to_vmem [thread:$0]  %s1186_s5, 128, %s61_s15, [#allocation10]  }
  0x47   :  { %1034 = dma.done.wait [#allocation4], 64  }
  0x48   :  { %1035 = vsyncadd [#allocation4], 4294967232 }
  0x49   :  { %1036 = dma.done.wait [#allocation7], 8224  }
  0x4a   :  { %1037 = vsyncadd [#allocation7], 4294959072 }
  0x4b   :  { %1038 = dma.done.wait [#allocation10], 128  }
  0x4c   :  { %1039 = vsyncadd [#allocation10], 4294967168  ;;  %v80_v1 = vld [vmem:[%s1181_s0] sm:$0xff]  ;;  %s1048_s3 = smov 127   ;;  %v1049_v6 = vmov 2   ;;  %s1050_s0 = smov 2  }
  0x4d   :  { %v81_v2 = vmul.f32 0.5, %v80_v1  ;;  %807 = vset.pattern.permute.xlu1 %v1049_v6  ;;  %v810_v7 = vld [vmem:[#allocation6 + $0x4] ss:$8 sps:$4 sm:$0xff]   ;;  %v814_v9 = vld [vmem:[#allocation6] ss:$8 sps:$4 sm:$0xff]   ;;  %vm707_vm0 = vcmask 57344  }
  0x4e   :  { %v812_v8 = vld [vmem:[#allocation6 + $0x104] ss:$8 sps:$4 sm:$0xff]   ;;  %v815_v10 = vld [vmem:[#allocation6 + $0x100] ss:$8 sps:$4 sm:$0xff]   ;;  %v816_v11 = vld [vmem:[#allocation6 + $0x14] ss:$8 sps:$4 sm:$0xff]   ;;  %552 = vmatprep.subr.bf16.mxu1 %v810_v7 }
  0x4f   :  { %908 = vtanh.f32 %v81_v2  ;;  %v818_v12 = vld [vmem:[#allocation6 + $0x114] ss:$8 sps:$4 sm:$0xff]   ;;  %593 = vmatprep.subr.bf16.mxu0 %v812_v8  ;;  %553 = vmatpush1.bf16.msra.mxu1 %v814_v9  ;;  %v820_v13 = vld [vmem:[#allocation6 + $0x10] ss:$8 sps:$4 sm:$0xff]   ;;  %v822_v15 = vld [vmem:[#allocation6 + $0x24] ss:$8 sps:$4 sm:$0xff]  }
  0x50   :  { %594 = vmatpush1.bf16.msra.mxu0 %v815_v10  ;;  %v821_v14 = vld [vmem:[#allocation6 + $0x110] ss:$8 sps:$4 sm:$0xff]   ;;  %554 = vmatprep.subr.bf16.mxu1 %v816_v11  ;;  %v824_v16 = vld [vmem:[#allocation6 + $0x124] ss:$8 sps:$4 sm:$0xff]   ;;  %v826_v17 = vld [vmem:[#allocation6 + $0x20] ss:$8 sps:$4 sm:$0xff]   ;;  %v112_v11 = vlaneseq }
  0x51   :  { %595 = vmatprep.subr.bf16.mxu0 %v818_v12  ;;  %v827_v19 = vld [vmem:[#allocation6 + $0x120] ss:$8 sps:$4 sm:$0xff]   ;;  %v828_v20 = vld [vmem:[#allocation6 + $0x34] ss:$8 sps:$4 sm:$0xff]   ;;  %v832_v23 = vld [vmem:[#allocation6 + $0x30] ss:$8 sps:$4 sm:$0xff]  }
  0x52   :  { %v830_v22 = vld [vmem:[#allocation6 + $0x134] ss:$8 sps:$4 sm:$0xff]   ;;  %v833_v24 = vld [vmem:[#allocation6 + $0x130] ss:$8 sps:$4 sm:$0xff]   ;;  %v834_v25 = vld [vmem:[#allocation6 + $0x44] ss:$8 sps:$4 sm:$0xff]  }
  0x53   :  { %555 = vmatpush1.bf16.msra.mxu1 %v820_v13  ;;  %v836_v26 = vld [vmem:[#allocation6 + $0x144] ss:$8 sps:$4 sm:$0xff]   ;;  %v838_v27 = vld [vmem:[#allocation6 + $0x40] ss:$8 sps:$4 sm:$0xff]   ;;  %v840_v29 = vld [vmem:[#allocation6 + $0x54] ss:$8 sps:$4 sm:$0xff]  }
  0x54   :  { %596 = vmatpush1.bf16.msra.mxu0 %v821_v14  ;;  %556 = vmatprep.subr.bf16.mxu1 %v822_v15  ;;  %v839_v28 = vld [vmem:[#allocation6 + $0x140] ss:$8 sps:$4 sm:$0xff]   ;;  %v842_v30 = vld [vmem:[#allocation6 + $0x154] ss:$8 sps:$4 sm:$0xff]   ;;  %v844_v31 = vld [vmem:[#allocation6 + $0x50] ss:$8 sps:$4 sm:$0xff]  }
  0x55   :  { %597 = vmatprep.subr.bf16.mxu0 %v824_v16  ;;  %v845_v32 = vld [vmem:[#allocation6 + $0x150] ss:$8 sps:$4 sm:$0xff]   ;;  %v846_v33 = vld [vmem:[#allocation6 + $0x64] ss:$8 sps:$4 sm:$0xff]   ;;  %v850_v35 = vld [vmem:[#allocation6 + $0x60] ss:$8 sps:$4 sm:$0xff]  }
  0x56   :  { %v848_v34 = vld [vmem:[#allocation6 + $0x164] ss:$8 sps:$4 sm:$0xff]   ;;  %v851_v36 = vld [vmem:[#allocation6 + $0x160] ss:$8 sps:$4 sm:$0xff]   ;;  %v852_v37 = vld [vmem:[#allocation6 + $0x74] ss:$8 sps:$4 sm:$0xff]  }
  0x57   :  { %557 = vmatpush1.bf16.msra.mxu1 %v826_v17  ;;  %v854_v38 = vld [vmem:[#allocation6 + $0x174] ss:$8 sps:$4 sm:$0xff]   ;;  %v856_v39 = vld [vmem:[#allocation6 + $0x70] ss:$8 sps:$4 sm:$0xff]   ;;  %v858_v41 = vld [vmem:[#allocation6 + $0x84] ss:$8 sps:$4 sm:$0xff]  }
  0x58   :  { %598 = vmatpush1.bf16.msra.mxu0 %v827_v19  ;;  %558 = vmatprep.subr.bf16.mxu1 %v828_v20  ;;  %v857_v40 = vld [vmem:[#allocation6 + $0x170] ss:$8 sps:$4 sm:$0xff]   ;;  %v860_v42 = vld [vmem:[#allocation6 + $0x184] ss:$8 sps:$4 sm:$0xff]   ;;  %v862_v43 = vld [vmem:[#allocation6 + $0x80] ss:$8 sps:$4 sm:$0xff]  }
  0x59   :  { %v909_v3 = vpop.eup %908  ;;  %599 = vmatprep.subr.bf16.mxu0 %v830_v22  ;;  %v863_v44 = vld [vmem:[#allocation6 + $0x180] ss:$8 sps:$4 sm:$0xff]   ;;  %v864_v45 = vld [vmem:[#allocation6 + $0x94] ss:$8 sps:$4 sm:$0xff]   ;;  %v868_v47 = vld [vmem:[#allocation6 + $0x90] ss:$8 sps:$4 sm:$0xff]  }
  0x5a   :  { %v83_v4 = vmul.f32 0.5, %v909_v3  ;;  %v866_v46 = vld [vmem:[#allocation6 + $0x194] ss:$8 sps:$4 sm:$0xff]   ;;  %v869_v48 = vld [vmem:[#allocation6 + $0x190] ss:$8 sps:$4 sm:$0xff]   ;;  %v1152_v12 = vshrl.u32 %v112_v11, 7 }
  0x5b   :  { %559 = vmatpush1.bf16.msra.mxu1 %v832_v23  ;;  %v870_v51 = vld [vmem:[#allocation6 + $0xa4] ss:$8 sps:$4 sm:$0xff]   ;;  %v874_v53 = vld [vmem:[#allocation6 + $0xa0] ss:$8 sps:$4 sm:$0xff]   ;;  %v876_v55 = vld [vmem:[#allocation6 + $0xb4] ss:$8 sps:$4 sm:$0xff]  }
  0x5c   :  { %v1147_v5 = vadd.f32 0.5, %v83_v4  ;;  %600 = vmatpush1.bf16.msra.mxu0 %v833_v24  ;;  %560 = vmatprep.subr.bf16.mxu1 %v834_v25  ;;  %v872_v52 = vld [vmem:[#allocation6 + $0x1a4] ss:$8 sps:$4 sm:$0xff]   ;;  %v875_v54 = vld [vmem:[#allocation6 + $0x1a0] ss:$8 sps:$4 sm:$0xff]   ;;  %v1161_v15 = vsub.s32 0, %v1152_v12 }
  0x5d   :  { %601 = vmatprep.subr.bf16.mxu0 %v836_v26  ;;  %v878_v56 = vld [vmem:[#allocation6 + $0x1b4] ss:$8 sps:$4 sm:$0xff]   ;;  %v880_v57 = vld [vmem:[#allocation6 + $0xb0] ss:$8 sps:$4 sm:$0xff]   ;;  %v882_v59 = vld [vmem:[#allocation6 + $0xc4] ss:$8 sps:$4 sm:$0xff]  }
  0x5e   :  { %86 = vrot.lane.b32.xlu0 %v1147_v5, %s1048_s3  ;;  %v881_v58 = vld [vmem:[#allocation6 + $0x1b0] ss:$8 sps:$4 sm:$0xff]   ;;  %v884_v60 = vld [vmem:[#allocation6 + $0x1c4] ss:$8 sps:$4 sm:$0xff]   ;;  %v886_v61 = vld [vmem:[#allocation6 + $0xc0] ss:$8 sps:$4 sm:$0xff]  }
  0x5f   :  { %561 = vmatpush1.bf16.msra.mxu1 %v838_v27  ;;  %v887_v62 = vld [vmem:[#allocation6 + $0x1c0] ss:$8 sps:$4 sm:$0xff]   ;;  %v888_v63 = vld [vmem:[#allocation6 + $0xd4] ss:$8 sps:$4 sm:$0xff]   ;;  %v892_v1 = vld [vmem:[#allocation6 + $0xd0] ss:$8 sps:$4 sm:$0xff]  }
  0x60   :  { %602 = vmatpush1.bf16.msra.mxu0 %v839_v28  ;;  %562 = vmatprep.subr.bf16.mxu1 %v840_v29  ;;  %v890_v0 = vld [vmem:[#allocation6 + $0x1d4] ss:$8 sps:$4 sm:$0xff]   ;;  %v893_v2 = vld [vmem:[#allocation6 + $0x1d0] ss:$8 sps:$4 sm:$0xff]   ;;  %v894_v3 = vld [vmem:[#allocation6 + $0xe4] ss:$8 sps:$4 sm:$0xff]  }
  0x61   :  { %603 = vmatprep.subr.bf16.mxu0 %v842_v30  ;;  %v896_v4 = vld [vmem:[#allocation6 + $0x1e4] ss:$8 sps:$4 sm:$0xff]   ;;  %v899_v6 = vld [vmem:[#allocation6 + $0x1e0] ss:$8 sps:$4 sm:$0xff]   ;;  %v900_v7 = vld [vmem:[#allocation6 + $0xf4] ss:$8 sps:$4 sm:$0xff]  }
  0x62   :  { %v902_v8 = vld [vmem:[#allocation6 + $0x1f4] ss:$8 sps:$4 sm:$0xff]   ;;  %v904_v9 = vld [vmem:[#allocation6 + $0xf0] ss:$8 sps:$4 sm:$0xff]   ;;  %v96_v14 = vld [vmem:[%s1182_s1 + $0x8] sm:$0xff]  ;;  %v122_v16 = vsub.s32 2, %v1152_v12 }
  0x63   :  { %563 = vmatpush1.bf16.msra.mxu1 %v844_v31  ;;  %v905_v10 = vld [vmem:[#allocation6 + $0x1f0] ss:$8 sps:$4 sm:$0xff]   ;;  %v118_v17 = vsub.s32 1, %v1152_v12  ;;  %v110_v19 = vld [vmem:[#allocation3] sm:$0xf]  ;;  %v99_v22 = vunpack.c.l.bf16 %v96_v14  ;;  %v100_v23 = vunpack.c.h.bf16 %v96_v14 }
  0x64   :  { %604 = vmatpush1.bf16.msra.mxu0 %v845_v32  ;;  %564 = vmatprep.subr.bf16.mxu1 %v846_v33  ;;  %v95_v13 = vld [vmem:[%s1182_s1] sm:$0xff]  ;;  %v115_v24 = vrot.slane %v110_v19, %v1161_v15  ;;  %v123_v25 = vrot.slane %v110_v19, %v122_v16  ;;  %s1052_s1 = smov [#allocation11]  }
  0x65   :  { %605 = vmatprep.subr.bf16.mxu0 %v848_v34  ;;  %v97_v20 = vunpack.c.l.bf16 %v95_v13  ;;  %v119_v26 = vrot.slane %v110_v19, %v118_v17  ;;  %s715_s30 = sshll.u32 %s1052_s1, 4  ;;  %s716_s30 = int_to_ptr.vmem [resolvable:$true] %s715_s30 }
  0x66   :  { %s1012_s8 = scalar_lea.vmem %s716_s30, 16  ;;  %s1016_s9 = scalar_lea.vmem %s716_s30, 32 }
  0x67   :  { %565 = vmatpush1.bf16.msra.mxu1 %v850_v35  ;;  %p1013_p4 = scmp.ne.s32.totalorder %s716_s30, %s1012_s8  ;;  %p1017_p5 = scmp.lt.s32.totalorder %s716_s30, %s716_s30 }
  0x68   :  { %606 = vmatpush1.bf16.msra.mxu0 %v851_v36  ;;  %566 = vmatprep.subr.bf16.mxu1 %v852_v37  ;;  %p1018_p6 = scmp.lt.s32.totalorder %s1016_s9, %s1012_s8 }
  0x69   :  { %607 = vmatprep.subr.bf16.mxu0 %v854_v38 }
  0x6a   :  { %p1019_p7 = por %p1018_p6, %p1017_p5 }
  0x6b   :  { %567 = vmatpush1.bf16.msra.mxu1 %v856_v39 }
  0x6c   :  { %608 = vmatpush1.bf16.msra.mxu0 %v857_v40  ;;  %568 = vmatprep.subr.bf16.mxu1 %v858_v41  ;;  %p1020_p8 = pnand %p1019_p7, %p1013_p4 }
  0x6d   :  { %609 = vmatprep.subr.bf16.mxu0 %v860_v42 }
  0x6f   :  { %569 = vmatpush1.bf16.msra.mxu1 %v862_v43 }
  0x70   :  { %610 = vmatpush1.bf16.msra.mxu0 %v863_v44  ;;  %570 = vmatprep.subr.bf16.mxu1 %v864_v45 }
  0x71   :  { %611 = vmatprep.subr.bf16.mxu0 %v866_v46 }
  0x73   :  { %571 = vmatpush1.bf16.msra.mxu1 %v868_v47 }
  0x74   :  { %612 = vmatpush1.bf16.msra.mxu0 %v869_v48  ;;  %572 = vmatprep.subr.bf16.mxu1 %v870_v51 }
  0x75   :  { %613 = vmatprep.subr.bf16.mxu0 %v872_v52 }
  0x77   :  { %573 = vmatpush1.bf16.msra.mxu1 %v874_v53 }
  0x78   :  { %614 = vmatpush1.bf16.msra.mxu0 %v875_v54  ;;  %574 = vmatprep.subr.bf16.mxu1 %v876_v55 }
  0x79   :  { %615 = vmatprep.subr.bf16.mxu0 %v878_v56 }
  0x7b   :  { %575 = vmatpush1.bf16.msra.mxu1 %v880_v57  ;;  %v644_v57 = vld [vmem:[#allocation9] sm:$0xff] }
  0x7c   :  { %616 = vmatpush1.bf16.msra.mxu0 %v881_v58  ;;  %576 = vmatprep.subr.bf16.mxu1 %v882_v59  ;;  %v791_v58 = vcombine.high %v644_v57, %v644_v57  ;;  %v692_v59 = vld [vmem:[#allocation2] sm:$0x1] }
  0x7d   :  { %617 = vmatprep.subr.bf16.mxu0 %v884_v60  ;;  %v1051_v60 = vmov 0  }
  0x7e   :  { %809 = vset.pattern.permute.xlu0 %v1051_v60 }
  0x7f   :  { %577 = vmatpush1.bf16.msra.mxu1 %v886_v61  ;;  %v220_v61 = vld [vmem:[#allocation8] sm:$0x3] }
  0x80   :  { %618 = vmatpush1.bf16.msra.mxu0 %v887_v62  ;;  %578 = vmatprep.subr.bf16.mxu1 %v888_v63  ;;  %v225_v62 = vrot.slane %v220_v61, %v1161_v15  ;;  %v229_v63 = vrot.slane %v220_v61, %v118_v17 }
  0x81   :  { %619 = vmatprep.subr.bf16.mxu0 %v890_v0 }
  0x83   :  { %579 = vmatpush1.bf16.msra.mxu1 %v892_v1 }
  0x84   :  { %620 = vmatpush1.bf16.msra.mxu0 %v893_v2  ;;  %580 = vmatprep.subr.bf16.mxu1 %v894_v3 }
  0x85   :  { %621 = vmatprep.subr.bf16.mxu0 %v896_v4 }
  0x88   :  { %622 = vmatpush1.bf16.msra.mxu0 %v899_v6 }
  0x89   :  { %623 = vmatprep.subr.bf16.mxu0 %v902_v8 }
  0x8c   :  { %624 = vmatpush1.bf16.msra.mxu0 %v905_v10 }
  0xd0   :  { %v87_v18 = vpop.permute.xlu0 %86 }
  0xd1   :  { %v89_v21 = vsub.f32 %v1147_v5, %v87_v18  ;;  %v126_v18 = vsub.s32 3, %v1152_v12 }
  0xd3   :  { %91 = vrot.lane.b32.xlu0 %v89_v21, %s1050_s0  ;;  %v98_v21 = vunpack.c.h.bf16 %v95_v13  ;;  %v127_v27 = vrot.slane %v110_v19, %v126_v18 }
 0x145   :  { %v92_v49 = vpop.permute.xlu0 %91 }
 0x146   :  { %v94_v50 = vmul.f32 %v92_v49, %v1147_v5  ;;  %v898_v5 = vld [vmem:[#allocation6 + $0xe0] ss:$8 sps:$4 sm:$0xff]  }
 0x147   :  { %581 = vmatpush1.bf16.msra.mxu1 %v898_v5 }
 0x148   :  { %103 = vperm.xlu1 %807, %v94_v50   ;;  %582 = vmatprep.subr.bf16.mxu1 %v900_v7 }
 0x14b   :  { %583 = vmatpush1.bf16.msra.mxu1 %v904_v9 }
 0x14c   :  { %808 = vset.pattern.permute.xlu1 %v1051_v60 }
 0x14d   :  { %695 = vperm.xlu1 %808, %v692_v59  }
 0x1c7   :  { %v104_v28 = vpop.permute.xlu1 %103 }
 0x1c8   :  { %v106_v29 = vmul.f32 %v104_v28, %v97_v20  ;;  %v107_v30 = vmul.f32 %v104_v28, %v98_v21  ;;  %v108_v31 = vmul.f32 %v104_v28, %v99_v22  ;;  %v109_v32 = vmul.f32 %v104_v28, %v100_v23 }
 0x1c9   :  { %v790_v23 = vcombine.low %v644_v57, %v644_v57 }
 0x1ca   :  { %v132_v33 = vadd.f32 %v115_v24, %v106_v29  ;;  %v134_v34 = vadd.f32 %v123_v25, %v108_v31  ;;  %v133_v35 = vadd.f32 %v119_v26, %v107_v30  ;;  %v135_v36 = vadd.f32 %v127_v27, %v109_v32 }
 0x1cc   :  { %v136_v37 = vpack.c.bf16 %v132_v33, %v132_v33  ;;  %v138_v38 = vpack.c.bf16 %v134_v34, %v134_v34  ;;  %v137_v39 = vpack.c.bf16 %v133_v35, %v133_v35  ;;  %v139_v40 = vpack.c.bf16 %v135_v36, %v135_v36  ;;  %v696_v24 = vpop.permute.xlu1 %695 }
 0x1cd   :  { %v701_v25 = vrot.slane %v696_v24, %v1161_v15 }
 0x1ce   :  { %v141_v41 = vmul.bf16 1056980736, %v137_v39  ;;  %v143_v42 = vmul.bf16 1056980736, %v139_v40  ;;  %v140_v43 = vmul.bf16 1056980736, %v136_v37 }
 0x1cf   :  { %v142_v44 = vmul.bf16 1056980736, %v138_v38 }
 0x1d0   :  { %910 = vtanh.bf16 %v141_v41 }
 0x1d1   :  { %912 = vtanh.bf16 %v143_v42 }
 0x1d2   :  { %914 = vtanh.bf16 %v140_v43 }
 0x1d3   :  { %916 = vtanh.bf16 %v142_v44 }
 0x1db   :  { %v911_v45 = vpop.eup %910 }
 0x1dc   :  { %v913_v46 = vpop.eup %912  ;;  %v149_v47 = vmul.bf16 1056980736, %v911_v45 }
 0x1dd   :  { %v915_v48 = vpop.eup %914  ;;  %v151_v49 = vmul.bf16 1056980736, %v913_v46 }
 0x1de   :  { %v917_v50 = vpop.eup %916  ;;  %v153_v51 = vadd.bf16 1056980736, %v149_v47  ;;  %v148_v52 = vmul.bf16 1056980736, %v915_v48 }
 0x1df   :  { %v155_v53 = vadd.bf16 1056980736, %v151_v49  ;;  %v150_v54 = vmul.bf16 1056980736, %v917_v50 }
 0x1e0   :  { %584 = vmatprep.mubr.bf16.mxu1 %v153_v51  ;;  %v152_v55 = vadd.bf16 1056980736, %v148_v52 }
 0x1e1   :  { %625 = vmatprep.mubr.bf16.mxu0 %v155_v53  ;;  %v154_v56 = vadd.bf16 1056980736, %v150_v54 }
 0x1e2   :  { %585 = vmatmul.mubr.bf16.vlgmr.msra.gmra.mrb[0].mxu1 %v152_v55 }
 0x1e3   :  { %626 = vmatmul.mubr.bf16.vlgmr.msra.gmra.mrb[0].mxu0 %v154_v56  ;;  %684 = vmatprep.mubr.bf16.mxu1 %v791_v58 }
 0x2b5   :  { %v586_v0 = vpop.f32.mrb[0].mxu1 }
 0x2b6   :  { %v587_v1 = vadd.f32 %v586_v0, %v225_v62  ;;  %v627_v2 = vpop.f32.mrb[0].mxu0  ;;  %v588_v3 = vpop.f32.mrb[1].mxu1 }
 0x2b7   :  { %v589_v4 = vadd.f32 %v588_v3, %v229_v63  ;;  %v629_v5 = vpop.f32.mrb[1].mxu0  ;;  %v590_v6 = vpop.f32.mrb[2].mxu1 }
 0x2b8   :  { %v628_v7 = vadd.f32 %v627_v2, %v587_v1  ;;  %v631_v8 = vpop.f32.mrb[2].mxu0  ;;  %v591_v9 = vpop.f32.mrb[3].mxu1 }
 0x2b9   :  { %v630_v10 = vadd.f32 %v629_v5, %v589_v4  ;;  %v632_v11 = vpop.f32.mrb[3].mxu0 }
 0x2ba   :  { %v634_v12 = vpack.c.bf16 %v628_v7, %v628_v7 }
 0x2bb   :  { %v635_v13 = vpack.c.bf16 %v630_v10, %v630_v10 }
 0x2bc   :  { %v636_v14 = vmul.bf16 1056980736, %v634_v12 }
 0x2bd   :  { %v637_v16 = vmul.bf16 1056980736, %v635_v13 }
 0x2be   :  { %918 = vtanh.bf16 %v636_v14 }
 0x2bf   :  { %920 = vtanh.bf16 %v637_v16 }
 0x2c9   :  { %v919_v18 = vpop.eup %918 }
 0x2ca   :  { %v921_v17 = vpop.eup %920  ;;  %v640_v19 = vmul.bf16 1056980736, %v919_v18 }
 0x2cb   :  { %v641_v20 = vmul.bf16 1056980736, %v921_v17 }
 0x2cc   :  { %v642_v22 = vadd.bf16 1056980736, %v640_v19 }
 0x2cd   :  { %v643_v21 = vadd.bf16 1056980736, %v641_v20 }
 0x2cf   :  { %652 = vmatprep.subr.bf16.mxu1 %v643_v21 }
 0x2d0   :  { %653 = vmatpush1.bf16.xpose.msra.mxu1 %v642_v22 }
 0x2d7   :  { %685 = vmatmul.mubr.bf16.vlgmr.msra.gmra.mrb[4].mxu1 %v790_v23 }
 0x3aa   :  { %v686_v26 = vpop.f32.mrb[4].mxu1 }
 0x3ab   :  { %v702_v27 = vadd.f32 %v701_v25, %v686_v26  ;;  %v688_v28 = vpop.f32.mrb[5].mxu1 }
 0x3ac   :  { %v689_v29 = vpop.f32.mrb[6].mxu1 }
 0x3ad   :  { %v703_v30 = vmul.f32 0.5, %v702_v27  ;;  %v690_v31 = vpop.f32.mrb[7].mxu1 }
 0x3af   :  { %922 = vtanh.f32 %v703_v30 }
 0x3b9   :  { %v923_v32 = vpop.eup %922 }
 0x3ba   :  { %v705_v33 = vmul.f32 0.5, %v923_v32 }
 0x3bc   :  { %v706_v34 = vadd.f32 0.5, %v705_v33 }
 0x3be   :  { %708 = vst.msk [vmem:[#allocation11] sm:$0x1] %vm707_vm0, %v706_v34 }
 0x3bf   :  { %1023 = shalt.err (!%p1020_p8)
}
 0x3c0   :  { %s1024_s6 = scalar_lea.hbm %s1188_s7, 16 }
 0x3c1   :  { %p1025_p9 = scmp.ne.s32.totalorder %s1188_s7, %s1024_s6  ;;  %p1028_p10 = scmp.lt.u32.totalorder %s1024_s6, %s1188_s7 }
 0x3c3   :  { %p1030_p11 = pnand %p1028_p10, %p1025_p9 }
 0x3c5   :  { %1033 = shalt.err (!%p1030_p11)
}
 0x3c6   :  { %718 = dma.vmem_to_hbm [thread:$0]  %s716_s30, 16, %s1188_s7, [#allocation5]  }
 0x3c7   :  { %1040 = dma.done.wait [#allocation5], 16  }
 0x3c8   :  { %1041 = vsyncadd [#allocation5], 4294967280 }
 0x3c9   :  { %722 = vsyncpa [#allocation4], 1 }
 0x3ca   :  { %723 = vsyncpa [#allocation7], 1 }
 0x3cb   :  { %724 = vsyncpa [#allocation10], 1 }
 0x3cc   :  { %725 = vsyncpa [#allocation5], 1 }

</bundles_post_ra>
